<compile_context>
chip_gen: v5e
topology: v5e:2x2
jax: 0.10.0
libtpu: 0.0.40
codegen_flags: <defaults>
</compile_context>

<pallas_src>
import functools

import jax
import jax.numpy as jnp
from jax.experimental import pallas as pl
from jax.experimental.pallas import tpu as pltpu


def highway_kernel(x_ref, w_ref, b_ref, o_ref):
    """One batch tile: fused (tm, D) @ (D, 2D) GEMM + sigmoid gates + highway blend."""
    d = o_ref.shape[-1]
    x = x_ref[...]
    # Single MXU pass over the packed [Wt^T | Wh^T] weight: one push/drain instead
    # of two, single VPU bias add, and 2x lane occupancy of the GEMM result.
    y = jnp.dot(x, w_ref[...], preferred_element_type=jnp.float32) + b_ref[...]
    t = jax.nn.sigmoid(y[:, :d])        # transform gate (EUP)
    h = jax.nn.sigmoid(y[:, d:])        # candidate      (EUP)
    xf = x.astype(jnp.float32)
    # Highway blend rewritten as x + t*(h - x): 2 VALU ops instead of 3, and no
    # materialized (1 - t) temporary.
    o_ref[...] = (xf + t * (h - xf)).astype(o_ref.dtype)


def pack_highway_params(wt, bt, wh, bh):
    """One-time pack of PyTorch-convention (out, in) Linear weights into the fused
    (in, 2*out) layout the kernel consumes. Doing this outside the hot call removes
    the per-call XLA transposes (un-hidden HBM read+write of each weight)."""
    w_packed = jnp.concatenate([wt.T, wh.T], axis=1)        # (D, 2D)
    b_packed = jnp.concatenate([bt, bh], axis=0)[None, :]   # (1, 2D)
    return w_packed, b_packed


@functools.partial(jax.jit, static_argnames=("block_m",))
def highway_forward(x, w_packed, b_packed, *, block_m=512):
    """HighLayer forward.

    x:        (B, D) activations
    w_packed: (D, 2D) fused [Wt^T | Wh^T]   (from pack_highway_params)
    b_packed: (1, 2D) fused [bt | bh]
    """
    B, D = x.shape
    tm = min(block_m, B)          # batch tile; weight stays VMEM-resident across tiles
    grid = (pl.cdiv(B, tm),)

    # TODO(synk): for very large D (packed weight > a few MiB, esp. v7x's 64 MiB VMEM /
    # v5e's 16 MiB scoped default) add K/N grid axes with a f32 VMEM accumulator and
    # bf16 matmul inputs; at small D the whole packed weight comfortably fits VMEM.
    return pl.pallas_call(
        highway_kernel,
        out_shape=jax.ShapeDtypeStruct((B, D), x.dtype),
        grid=grid,
        in_specs=[
            pl.BlockSpec((tm, D), lambda i: (i, 0)),       # x batch tile (pipelined)
            pl.BlockSpec((D, 2 * D), lambda i: (0, 0)),    # packed weight, resident
            pl.BlockSpec((1, 2 * D), lambda i: (0, 0)),    # packed bias, resident
        ],
        out_specs=pl.BlockSpec((tm, D), lambda i: (i, 0)),
        compiler_params=pltpu.CompilerParams(
            # Batch tiles are independent -> shard across TensorCores (v7x megacore).
            dimension_semantics=("parallel",),
        ),
    )(x, w_packed, b_packed)


def highway_ref(x, wt, bt, wh, bh):
    # Pure-JAX reference mirroring the PyTorch module exactly.
    t = jax.nn.sigmoid(x @ wt.T + bt)
    h = jax.nn.sigmoid(x @ wh.T + bh)
    return h * t + x * (1.0 - t)


if __name__ == "__main__":
    input_len = 32   # D
    batch = 8        # B

    key = jax.random.PRNGKey(0)
    kx, kwt, kbt, kwh, kbh = jax.random.split(key, 5)

    # Deterministic PyTorch-style init: U(-1/sqrt(in), 1/sqrt(in))
    bound = 1.0 / (input_len ** 0.5)
    x = jax.random.normal(kx, (batch, input_len), dtype=jnp.float32)
    wt = jax.random.uniform(kwt, (input_len, input_len), jnp.float32, -bound, bound)
    bt = jax.random.uniform(kbt, (input_len,), jnp.float32, -bound, bound)
    wh = jax.random.uniform(kwh, (input_len, input_len), jnp.float32, -bound, bound)
    bh = jax.random.uniform(kbh, (input_len,), jnp.float32, -bound, bound)

    # One-time weight pack (outside the hot path).
    w_packed, b_packed = pack_highway_params(wt, bt, wh, bh)

    out = highway_forward(x, w_packed, b_packed)
    out = jax.block_until_ready(out)

    ref = highway_ref(x, wt, bt, wh, bh)
    assert out.shape == (batch, input_len)
    assert jnp.allclose(out, ref, atol=1e-5, rtol=1e-5), "mismatch vs reference"

    print("KERNEL_OK")
</pallas_src>

<mosaic_0001>
module attributes {stable_mosaic.version = 11 : i64} {
  func.func @highway_kernel(%arg0: i32, %arg1: memref<8x32xf32, #tpu.memory_space<vmem>>, %arg2: memref<32x64xf32, #tpu.memory_space<vmem>>, %arg3: memref<1x64xf32, #tpu.memory_space<vmem>>, %arg4: memref<8x32xf32, #tpu.memory_space<vmem>>) attributes {dimension_semantics = [#tpu.dimension_semantics<parallel>], iteration_bounds = array<i64: 1>, scalar_prefetch = 0 : i64, scratch_operands = 0 : i64, tpu.core_type = #tpu.core_type<tc>, window_params = [{transform_indices = @transform_0, window_bounds = array<i64: 8, 32>}, {pipeline_mode = #tpu.pipeline_mode<synchronous>, transform_indices = @transform_1, window_bounds = array<i64: 32, 64>}, {pipeline_mode = #tpu.pipeline_mode<synchronous>, transform_indices = @transform_2, window_bounds = array<i64: 1, 64>}, {transform_indices = @transform_3, window_bounds = array<i64: 8, 32>}]} {
    %c0 = arith.constant 0 : index
    %c0_0 = arith.constant 0 : index
    %0 = vector.load %arg1[%c0, %c0_0] : memref<8x32xf32, #tpu.memory_space<vmem>>, vector<8x32xf32>
    %c0_1 = arith.constant 0 : index
    %c0_2 = arith.constant 0 : index
    %1 = vector.load %arg2[%c0_1, %c0_2] : memref<32x64xf32, #tpu.memory_space<vmem>>, vector<32x64xf32>
    %cst = arith.constant dense<0.000000e+00> : vector<8x64xf32>
    %2 = tpu.matmul %0, %1, %cst {dimension_numbers = #tpu.dot_dimension_numbers<[1], [0], [0], [1], [0, 0, 1, 1], [], []>} : vector<8x32xf32>, vector<32x64xf32>, vector<8x64xf32> -> vector<8x64xf32>
    %c0_3 = arith.constant 0 : index
    %c0_4 = arith.constant 0 : index
    %3 = vector.load %arg3[%c0_3, %c0_4] : memref<1x64xf32, #tpu.memory_space<vmem>>, vector<1x64xf32>
    %4 = vector.broadcast %3 : vector<1x64xf32> to vector<8x64xf32>
    %5 = arith.addf %2, %4 : vector<8x64xf32>
    %6 = vector.extract_strided_slice %5 {offsets = [0, 0], sizes = [8, 32], strides = [1, 1]} : vector<8x64xf32> to vector<8x32xf32>
    %7 = arith.negf %6 : vector<8x32xf32>
    %8 = math.exp %7 : vector<8x32xf32>
    %cst_5 = arith.constant 1.000000e+00 : f32
    %9 = vector.broadcast %cst_5 : f32 to vector<8x32xf32>
    %10 = arith.addf %9, %8 : vector<8x32xf32>
    %11 = arith.divf %9, %10 : vector<8x32xf32>
    %12 = vector.extract_strided_slice %5 {offsets = [0, 32], sizes = [8, 32], strides = [1, 1]} : vector<8x64xf32> to vector<8x32xf32>
    %13 = arith.negf %12 : vector<8x32xf32>
    %14 = math.exp %13 : vector<8x32xf32>
    %cst_6 = arith.constant 1.000000e+00 : f32
    %15 = vector.broadcast %cst_6 : f32 to vector<8x32xf32>
    %16 = arith.addf %15, %14 : vector<8x32xf32>
    %17 = arith.divf %15, %16 : vector<8x32xf32>
    %18 = arith.subf %17, %0 : vector<8x32xf32>
    %19 = arith.mulf %11, %18 : vector<8x32xf32>
    %20 = arith.addf %0, %19 : vector<8x32xf32>
    %c0_7 = arith.constant 0 : index
    %c0_8 = arith.constant 0 : index
    %21 = vector.load %arg4[%c0_7, %c0_8] : memref<8x32xf32, #tpu.memory_space<vmem>>, vector<8x32xf32>
    tpu.vector_store %arg4[%c0_7, %c0_8], %20 {strides = array<i32>} : memref<8x32xf32, #tpu.memory_space<vmem>>, vector<8x32xf32>,
    return
  }
  func.func @transform_0(%arg0: i32) -> (i32, i32) {
    %c0_i32 = arith.constant 0 : i32
    %c0_i32_0 = arith.constant 0 : i32
    return %arg0, %c0_i32 : i32, i32
  }
  func.func @transform_1(%arg0: i32) -> (i32, i32) {
    %c0_i32 = arith.constant 0 : i32
    %c0_i32_0 = arith.constant 0 : i32
    %c0_i32_1 = arith.constant 0 : i32
    return %c0_i32, %c0_i32_0 : i32, i32
  }
  func.func @transform_2(%arg0: i32) -> (i32, i32) {
    %c0_i32 = arith.constant 0 : i32
    %c0_i32_0 = arith.constant 0 : i32
    %c0_i32_1 = arith.constant 0 : i32
    return %c0_i32, %c0_i32_0 : i32, i32
  }
  func.func @transform_3(%arg0: i32) -> (i32, i32) {
    %c0_i32 = arith.constant 0 : i32
    %c0_i32_0 = arith.constant 0 : i32
    return %arg0, %c0_i32 : i32, i32
  }
}

</mosaic_0001>

<bundles_post_ra>
// kernel: highway_forward.1
= control target key start
LH: loop header
LB: loop body
LE: loop exit
PB: predicated region body
PF: predicated region fallthrough
CT: control target
= control target key end

     0   :  { %8 = vsyncpa [#allocation3], 0  ;;  %s259_s0 = inlined_call_operand.hbm [shape: f32[8,32], index: 0, kind: input, shape index: {}]   ;;  %s260_s1 = inlined_call_operand.hbm [shape: f32[32,64], index: 1, kind: input, shape index: {}]   ;;  %s261_s2 = inlined_call_operand.vmem [shape: f32[1,64], index: 2, kind: input, shape index: {}]   ;;  %s262_s3 = inlined_call_operand.hbm [shape: f32[8,32], index: 3, kind: output, shape index: {}]  }
   0x1   :  { %9 = vsyncpa [#allocation6], 0 }
   0x2   :  { %10 = vsyncpa [#allocation4], 0  ;;  %s16_s14 = sshll.u32 %s259_s0, 4  ;;  %s218_s15 = smov [#allocation2]   ;;  %s17_s14 = int_to_ptr.hbm [resolvable:$true] %s16_s14 }
   0x3   :  { %s18_s16 = sshll.u32 %s218_s15, 4  ;;  %s26_s19 = sshll.u32 %s260_s1, 4  ;;  %s19_s16 = int_to_ptr.vmem [resolvable:$true] %s18_s16  ;;  %s27_s19 = int_to_ptr.hbm [resolvable:$true] %s26_s19 }
   0x4   :  { %21 = dma.hbm_to_vmem [thread:$0]  %s17_s14, 128, %s19_s16, [#allocation3]  }
   0x5   :  { %s219_s20 = smov [#allocation5]   ;;  %s220_s22 = smov 128  }
   0x6   :  { %s28_s21 = sshll.u32 %s219_s20, 4  ;;  %s221_s23 = smov 8   ;;  %s29_s21 = int_to_ptr.vmem [resolvable:$true] %s28_s21 }
   0x7   :  { %34 = dma.hbm_to_vmem [thread:$0]  %s27_s19, 512, %s29_s21, [#allocation6], %s220_s22, %s220_s22, %s221_s23  }
   0x8   :  { %212 = dma.done.wait [#allocation3], 128  }
   0x9   :  { %213 = vsyncadd [#allocation3], 4294967168 }
   0xa   :  { %214 = dma.done.wait [#allocation6], 512  }
   0xb   :  { %215 = vsyncadd [#allocation6], 4294966784  ;;  %v49_v0 = vld [vmem:[#allocation5 + $0x18] sm:$0xff]  ;;  %v48_v1 = vld [vmem:[#allocation5 + $0x10] sm:$0xff]  ;;  %s222_s0 = smov 32   ;;  %vm54_vm0 = vcmask 261120  }
   0xc   :  { %70 = vmatpush.msra.mxu0 %v49_v0  ;;  %v45_v2 = vld [vmem:[#allocation2] sm:$0xff]  ;;  %v47_v3 = vld [vmem:[#allocation5 + $0x8] sm:$0xff]  ;;  %v46_v4 = vld [vmem:[#allocation5] sm:$0xff]  ;;  %s224_s25 = smov [#allocation7]   ;;  %s115_s29 = sshll.u32 %s262_s3, 4  ;;  %s116_s29 = int_to_ptr.hbm [resolvable:$true] %s115_s29 }
   0xd   :  { %97 = vrot.lane.b32.xlu0 %v45_v2, %s222_s0  ;;  %v135_v5 = vld [vmem:[%s261_s2] ss:$0 sm:$0xff]  ;;  %s223_s2 = smov 96   ;;  %s113_s26 = sshll.u32 %s224_s25, 4  ;;  %s114_s26 = int_to_ptr.vmem [resolvable:$true] %s113_s26 }
   0xe   :  { %71 = vmatpush.msra.mxu0 %v48_v1 }
  0x10   :  { %72 = vmatpush.msra.mxu0 %v47_v3 }
  0x12   :  { %73 = vmatpush.msra.mxu0 %v46_v4 }
  0x13   :  { %126 = vmatmul.msk.f32.vlgmr.msra.gmra.mxu0 %vm54_vm0, %v45_v2 }
  0x7f   :  { %v98_v18 = vpop.permute.xlu0 %97 }
  0x90   :  { %v75_v6 = vpop.f32.mrf.mxu0 }
  0x91   :  { %v76_v7 = vadd.f32 %v135_v5, %v75_v6 }
  0x93   :  { %v127_v8 = vmul.f32 -1.442695, %v76_v7 }
  0x95   :  { %136 = vpow2.f32 %v127_v8 }
  0x9b   :  { %v137_v9 = vpop.eup %136 }
  0x9c   :  { %v81_v10 = vadd.f32 1.0, %v137_v9 }
  0x9e   :  { %138 = vrcp.f32 %v81_v10  ;;  %v93_v14 = vand.u32 2147483648, %v81_v10  ;;  %v91_v16 = vand.u32 2147483647, %v81_v10  ;;  %vm87_vm2 = vweird.f32 %v81_v10 }
  0xa0   :  { %v94_v19 = vor.u32 1.1754944e-38, %v93_v14  ;;  %vm92_vm4 = vcmp.eq.f32.partialorder %v91_v16, 8.507059e+37 }
  0xa4   :  { %v139_v11 = vpop.eup %138 }
  0xa5   :  { %v83_v12 = vmul.f32 %v139_v11, %v81_v10  ;;  %vm88_vm1 = vweird.f32 %v139_v11 }
  0xa6   :  { %vm89_vm3 = vmor %vm87_vm2, %vm88_vm1 }
  0xa7   :  { %v84_v13 = vsub.f32 1.0, %v83_v12 }
  0xa9   :  { %v85_v15 = vmul.f32 %v139_v11, %v84_v13 }
  0xab   :  { %v86_v17 = vadd.f32 %v139_v11, %v85_v15 }
  0xad   :  { %v90_v20 = vsel %vm89_vm3, %v139_v11, %v86_v17 }
  0xae   :  { %v95_v21 = vsel %vm92_vm4, %v94_v19, %v90_v20 }
  0xaf   :  { %v100_v22 = vsub.f32 %v95_v21, %v98_v18 }
  0xb1   :  { %102 = vrot.lane.b32.xlu0 %v100_v22, %s223_s2 }
 0x123   :  { %v103_v23 = vpop.permute.xlu0 %102 }
 0x124   :  { %v105_v24 = vmul.f32 %v103_v23, %v95_v21 }
 0x126   :  { %v106_v25 = vadd.f32 %v105_v24, %v45_v2 }
 0x128   :  { %107 = vst.msk [vmem:[#allocation7] sm:$0xff] %vm54_vm0, %v106_v25 }
 0x129   :  { %118 = dma.vmem_to_hbm [thread:$0]  %s114_s26, 128, %s116_s29, [#allocation4]  }
 0x12a   :  { %216 = dma.done.wait [#allocation4], 128  }
 0x12b   :  { %217 = vsyncadd [#allocation4], 4294967168 }
 0x12c   :  { %123 = vsyncpa [#allocation3], 1 }
 0x12d   :  { %124 = vsyncpa [#allocation6], 1 }
 0x12e   :  { %125 = vsyncpa [#allocation4], 1 }

</bundles_post_ra>
